<compile_context>
chip_gen: v6e
topology: v6e:2x2x1
jax: 0.10.0
libtpu: 0.0.40
codegen_flags: <defaults>
</compile_context>

<pallas_src>
import functools
import math

import jax
import jax.numpy as jnp
from jax import lax
from jax.experimental import pallas as pl
from jax.experimental.pallas import tpu as pltpu

_INV_SQRT2 = 1.0 / math.sqrt(2.0)
_SQRT_2_OVER_PI = math.sqrt(2.0 / math.pi)


def _round_up(a, b):
    return ((a + b - 1) // b) * b


def _gelu(h, approximate):
    if approximate:
        # tanh form runs on the EUP slot instead of a long VALU erf polynomial
        # (useful on v6e/v7x where the fast MXU makes the VALU the binding
        # unit). ~1e-3 rel deviation from PyTorch's exact-erf default.
        return 0.5 * h * (1.0 + jnp.tanh(_SQRT_2_OVER_PI * (h + 0.044715 * h * h * h)))
    return 0.5 * h * (1.0 + lax.erf(h * _INV_SQRT2))


# --------------------------------------------------------------------------
# Kernels
# --------------------------------------------------------------------------
def _embed_kernel_fused(x_ref, w1_ref, b1_ref, w2_ref, b2_ref, o_ref, *, approximate):
    # (tm, D_in) @ (D_in, D_emb_p) -> f32, + f32 bias, GELU.
    h = jnp.dot(x_ref[...], w1_ref[...], preferred_element_type=jnp.float32)
    h = _gelu(h + b1_ref[...], approximate)
    # Second matmul: bf16 activations, f32 accumulate, f32 bias.
    y = jnp.dot(h.astype(w2_ref.dtype), w2_ref[...],
                preferred_element_type=jnp.float32)
    o_ref[...] = (y + b2_ref[...]).astype(o_ref.dtype)


def _embed_kernel_ktiled(x_ref, w1_ref, b1_ref, w2_ref, b2_ref, o_ref, acc_ref,
                         *, approximate):
    # Grid = (rows, emb_dim tiles). The second matmul's contraction dim
    # (emb_dim) is tiled; the first matmul + GELU is tiled consistently, so
    # nothing is recomputed. acc_ref is the resident f32 output accumulator.
    k = pl.program_id(1)

    @pl.when(k == 0)
    def _():
        acc_ref[...] = jnp.zeros_like(acc_ref)

    h = jnp.dot(x_ref[...], w1_ref[...], preferred_element_type=jnp.float32)
    h = _gelu(h + b1_ref[...], approximate)
    acc_ref[...] += jnp.dot(h.astype(w2_ref.dtype), w2_ref[...],
                            preferred_element_type=jnp.float32)

    @pl.when(k == pl.num_programs(1) - 1)
    def _():
        o_ref[...] = (acc_ref[...] + b2_ref[...]).astype(o_ref.dtype)


# --------------------------------------------------------------------------
# Host-side helpers
# --------------------------------------------------------------------------
def _vmem_cap_bytes():
    """Generation-aware VMEM budget with headroom for Mosaic internal scratch."""
    try:
        cap = int(pltpu.get_tpu_info().vmem_capacity_bytes)
    except Exception:
        cap = 64 << 20  # conservative default: v7x per-TensorCore VMEM
    # Leave >= 8 MiB (or 1/8th) headroom: never set the limit to physical VMEM.
    return max(cap - max(8 << 20, cap // 8), 24 << 20)


def prepare_params(w1, b1, w2, b2, *, compute_dtype=jnp.bfloat16):
    """Cast + pad the weights ONCE (hoisted out of the per-call hot path).

    w1: (input_dim, emb_dim)  -- transpose of PyTorch nn.Linear's (out, in).
    w2: (emb_dim, emb_dim), b1/b2: (emb_dim,).
    """
    input_dim, emb_dim = w1.shape
    cd = jnp.dtype(compute_dtype)
    d_p = _round_up(emb_dim, 128)  # lane-dense output / MXU-N fill
    pad = d_p - emb_dim
    w1c = w1.astype(cd)
    w2c = w2.astype(cd)
    b1f = b1.astype(jnp.float32).reshape(1, emb_dim)
    b2f = b2.astype(jnp.float32).reshape(1, emb_dim)
    if pad:
        # Zero W1 cols + zero b1 -> GELU(0)=0 hidden cols; zero W2 rows
        # contribute nothing; padded output cols are sliced off on return.
        w1c = jnp.pad(w1c, ((0, 0), (0, pad)))
        w2c = jnp.pad(w2c, ((0, pad), (0, pad)))
        b1f = jnp.pad(b1f, ((0, 0), (0, pad)))
        b2f = jnp.pad(b2f, ((0, 0), (0, pad)))
    return dict(w1=w1c, b1=b1f, w2=w2c, b2=b2f,
                input_dim=int(input_dim), emb_dim=int(emb_dim),
                emb_dim_padded=int(d_p), compute_dtype=cd)


def embed_forward(x, params, *, tm=512, out_dtype=None, approximate_gelu=False,
                  split_for_megacore=False, force_k_tiling=False, k_tile=None):
    """Fused Embed forward: GELU(x2d @ W1 + b1) @ W2 + b2, x2d = x.reshape(-1, input_dim)."""
    D_in = params["input_dim"]
    D_emb = params["emb_dim"]
    D_emb_p = params["emb_dim_padded"]
    cd = params["compute_dtype"]
    w1c, b1f, w2c, b2f = params["w1"], params["b1"], params["w2"], params["b2"]

    x2d = x.reshape(-1, D_in)
    M = x2d.shape[0]
    out_dtype = jnp.dtype(out_dtype) if out_dtype is not None else x.dtype
    itemc = cd.itemsize
    itemo = jnp.dtype(out_dtype).itemsize

    row_unit = 32 // itemc  # sublane packing of the row tile (16 for bf16)

    # Balance ragged M across grid steps (no padding up to grid_m * tm).
    tm_req = max(row_unit, min(int(tm), _round_up(M, row_unit)))
    grid_m = pl.cdiv(M, tm_req)
    if split_for_megacore and grid_m == 1 and M >= 2 * row_unit:
        grid_m = 2  # only pays off on chips with 2 TensorCores (v7x)
    tm_eff = _round_up(pl.cdiv(M, grid_m), row_unit)

    vmem_cap = _vmem_cap_bytes()

    def fused_est(tm_):
        # x/out double-buffered; weights & biases single-buffered.
        return (2 * (tm_ * D_in * itemc + tm_ * D_emb_p * itemo)
                + (D_in * D_emb_p + D_emb_p * D_emb_p) * itemc
                + 2 * D_emb_p * 4
                + 4 * tm_ * D_emb_p * 4)  # f32 intermediates + slack

    def ktiled_est(tm_, tk_):
        return (2 * (tm_ * D_in * itemc + tm_ * D_emb_p * itemo
                     + D_in * tk_ * itemc + tk_ * D_emb_p * itemc + tk_ * 4)
                + D_emb_p * 4
                + tm_ * D_emb_p * 4        # f32 accumulator scratch
                + 3 * tm_ * tk_ * 4)       # per-step intermediates

    use_ktiled = force_k_tiling or fused_est(tm_eff) > vmem_cap

    if use_ktiled:
        if k_tile is not None and D_emb_p % int(k_tile) == 0:
            tk = int(k_tile)
        else:
            cands = [c * 128 for c in (16, 8, 4, 2, 1)
                     if c * 128 <= D_emb_p and D_emb_p % (c * 128) == 0]
            tk = next((t for t in cands if ktiled_est(tm_eff, t) <= vmem_cap),
                      cands[-1])
        while ktiled_est(tm_eff, tk) > vmem_cap and tm_eff > 2 * row_unit:
            tm_eff = _round_up(pl.cdiv(tm_eff, 2), row_unit)
        est = ktiled_est(tm_eff, tk)
    else:
        tk = D_emb_p
        est = fused_est(tm_eff)

    grid_m = pl.cdiv(M, tm_eff)
    M_pad = grid_m * tm_eff

    xc = x2d.astype(cd)
    if M_pad != M:  # only copy x when the row count is ragged w.r.t. the tile
        xc = jnp.pad(xc, ((0, M_pad - M), (0, 0)))

    vmem_limit = int(min(vmem_cap, max(16 << 20, est)))
    cost = pl.CostEstimate(
        flops=int(2 * M * (D_in + D_emb) * D_emb),
        transcendentals=int(M * D_emb),
        bytes_accessed=int(M * D_in * itemc
                           + (D_in + D_emb_p) * D_emb_p * itemc + 2 * D_emb_p * 4
                           + M * D_emb_p * itemo),
    )

    resident = pl.Buffered(1)  # constant blocks: no point double-buffering

    if not use_ktiled:
        out = pl.pallas_call(
            functools.partial(_embed_kernel_fused, approximate=approximate_gelu),
            out_shape=jax.ShapeDtypeStruct((M_pad, D_emb_p), out_dtype),
            grid_spec=pltpu.PrefetchScalarGridSpec(
                num_scalar_prefetch=0,
                grid=(grid_m,),
                in_specs=[
                    pl.BlockSpec((tm_eff, D_in), lambda i: (i, 0)),       # x tile
                    pl.BlockSpec((D_in, D_emb_p), lambda i: (0, 0),
                                 pipeline_mode=resident),                  # W1
                    pl.BlockSpec((1, D_emb_p), lambda i: (0, 0),
                                 pipeline_mode=resident),                  # b1 (f32)
                    pl.BlockSpec((D_emb_p, D_emb_p), lambda i: (0, 0),
                                 pipeline_mode=resident),                  # W2
                    pl.BlockSpec((1, D_emb_p), lambda i: (0, 0),
                                 pipeline_mode=resident),                  # b2 (f32)
                ],
                out_specs=pl.BlockSpec((tm_eff, D_emb_p), lambda i: (i, 0)),
            ),
            compiler_params=pltpu.CompilerParams(
                dimension_semantics=("parallel",),
                vmem_limit_bytes=vmem_limit),
            cost_estimate=cost,
        )(xc, w1c, b1f, w2c, b2f)
    else:
        grid_k = D_emb_p // tk
        out = pl.pallas_call(
            functools.partial(_embed_kernel_ktiled, approximate=approximate_gelu),
            out_shape=jax.ShapeDtypeStruct((M_pad, D_emb_p), out_dtype),
            grid_spec=pltpu.PrefetchScalarGridSpec(
                num_scalar_prefetch=0,
                grid=(grid_m, grid_k),
                in_specs=[
                    pl.BlockSpec((tm_eff, D_in), lambda i, k: (i, 0)),     # x tile
                    pl.BlockSpec((D_in, tk), lambda i, k: (0, k)),         # W1 k-slice
                    pl.BlockSpec((1, tk), lambda i, k: (0, k)),            # b1 k-slice
                    pl.BlockSpec((tk, D_emb_p), lambda i, k: (k, 0)),      # W2 k-slice
                    pl.BlockSpec((1, D_emb_p), lambda i, k: (0, 0),
                                 pipeline_mode=resident),                  # b2 (f32)
                ],
                out_specs=pl.BlockSpec((tm_eff, D_emb_p), lambda i, k: (i, 0)),
                scratch_shapes=[pltpu.VMEM((tm_eff, D_emb_p), jnp.float32)],
            ),
            compiler_params=pltpu.CompilerParams(
                dimension_semantics=("parallel", "arbitrary"),
                vmem_limit_bytes=vmem_limit),
            cost_estimate=cost,
        )(xc, w1c, b1f, w2c, b2f)

    if M_pad == M and D_emb_p == D_emb:
        return out  # skip the no-op slice
    return out[:M, :D_emb]


# --------------------------------------------------------------------------
# Init + reference
# --------------------------------------------------------------------------
def init_params(key, input_dim, emb_dim, dtype=jnp.float32):
    """Deterministic init matching nn.Linear's U(-1/sqrt(fan_in), 1/sqrt(fan_in))."""
    k1, k2, k3, k4 = jax.random.split(key, 4)
    lim1 = 1.0 / math.sqrt(input_dim)
    lim2 = 1.0 / math.sqrt(emb_dim)
    # Stored as (in, out): transpose of PyTorch's (out, in) weight layout.
    w1 = jax.random.uniform(k1, (input_dim, emb_dim), dtype, -lim1, lim1)
    b1 = jax.random.uniform(k2, (emb_dim,), dtype, -lim1, lim1)
    w2 = jax.random.uniform(k3, (emb_dim, emb_dim), dtype, -lim2, lim2)
    b2 = jax.random.uniform(k4, (emb_dim,), dtype, -lim2, lim2)
    return w1, b1, w2, b2


def _ref_forward(x, w1, b1, w2, b2, *, input_dim, compute_dtype=jnp.bfloat16):
    """Plain-JAX reference mirroring the kernel's bf16-in / f32-accumulate path."""
    cd = jnp.dtype(compute_dtype)
    x2d = x.reshape(-1, input_dim).astype(cd).astype(jnp.float32)
    w1q = w1.astype(cd).astype(jnp.float32)
    w2q = w2.astype(cd).astype(jnp.float32)
    h = x2d @ w1q + b1.astype(jnp.float32)
    h = 0.5 * h * (1.0 + lax.erf(h * _INV_SQRT2))
    h = h.astype(cd).astype(jnp.float32)
    return (h @ w2q + b2.astype(jnp.float32)).astype(x.dtype)


if __name__ == "__main__":
    key = jax.random.PRNGKey(0)
    kx1, kx2, kx3, kp1, kp2 = jax.random.split(key, 5)

    # ---- Case 1: tiny input (batch=2, seq=4) -> (8, 32), fused path, one tile.
    input_dim, emb_dim = 32, 64
    w1, b1, w2, b2 = init_params(kp1, input_dim, emb_dim)
    params = prepare_params(w1, b1, w2, b2)  # cast/pad hoisted out of the hot path

    x_small = jax.random.normal(kx1, (2, 4, input_dim), dtype=jnp.float32)
    out_small = jax.block_until_ready(embed_forward(x_small, params))
    ref_small = _ref_forward(x_small, w1, b1, w2, b2, input_dim=input_dim)
    assert out_small.shape == (8, emb_dim)
    assert jnp.allclose(out_small, ref_small, atol=1e-2, rtol=1e-2)

    # ---- Case 2: ragged M=576 exercising the balanced multi-step row grid.
    x_big = jax.random.normal(kx2, (8, 72, input_dim), dtype=jnp.float32)
    out_big = jax.block_until_ready(embed_forward(x_big, params, tm=512))
    ref_big = _ref_forward(x_big, w1, b1, w2, b2, input_dim=input_dim)
    assert out_big.shape == (8 * 72, emb_dim)
    assert jnp.allclose(out_big, ref_big, atol=1e-2, rtol=1e-2)

    # ---- Case 3: forced K-tiled path (emb_dim=256, tk=128 -> 2 reduction steps),
    #      the path large-emb_dim / v7x problems take automatically.
    emb_dim2 = 256
    w1b, b1b, w2b, b2b = init_params(kp2, input_dim, emb_dim2)
    params2 = prepare_params(w1b, b1b, w2b, b2b)
    x_med = jax.random.normal(kx3, (4, 36, input_dim), dtype=jnp.float32)
    out_med = jax.block_until_ready(
        embed_forward(x_med, params2, force_k_tiling=True, k_tile=128))
    ref_med = _ref_forward(x_med, w1b, b1b, w2b, b2b, input_dim=input_dim)
    assert out_med.shape == (4 * 36, emb_dim2)
    assert jnp.allclose(out_med, ref_med, atol=1e-2, rtol=1e-2)

    print("KERNEL_OK")
</pallas_src>

<mosaic_0001>
module attributes {stable_mosaic.version = 11 : i64} {
  func.func @_embed_kernel_fused(%arg0: i32, %arg1: memref<16x32xbf16, #tpu.memory_space<vmem>>, %arg2: memref<32x128xbf16, #tpu.memory_space<vmem>>, %arg3: memref<1x128xf32, #tpu.memory_space<vmem>>, %arg4: memref<128x128xbf16, #tpu.memory_space<vmem>>, %arg5: memref<1x128xf32, #tpu.memory_space<vmem>>, %arg6: memref<16x128xf32, #tpu.memory_space<vmem>>) attributes {dimension_semantics = [#tpu.dimension_semantics<parallel>], iteration_bounds = array<i64: 1>, scalar_prefetch = 0 : i64, scratch_operands = 0 : i64, tpu.core_type = #tpu.core_type<tc>, window_params = [{transform_indices = @transform_0, window_bounds = array<i64: 16, 32>}, {pipeline_mode = #tpu.pipeline_mode<synchronous>, transform_indices = @transform_1, window_bounds = array<i64: 32, 128>}, {pipeline_mode = #tpu.pipeline_mode<synchronous>, transform_indices = @transform_2, window_bounds = array<i64: 1, 128>}, {pipeline_mode = #tpu.pipeline_mode<synchronous>, transform_indices = @transform_3, window_bounds = array<i64: 128, 128>}, {pipeline_mode = #tpu.pipeline_mode<synchronous>, transform_indices = @transform_4, window_bounds = array<i64: 1, 128>}, {transform_indices = @transform_5, window_bounds = array<i64: 16, 128>}]} {
    %c0 = arith.constant 0 : index
    %c0_0 = arith.constant 0 : index
    %0 = vector.load %arg1[%c0, %c0_0] : memref<16x32xbf16, #tpu.memory_space<vmem>>, vector<16x32xbf16>
    %c0_1 = arith.constant 0 : index
    %c0_2 = arith.constant 0 : index
    %1 = vector.load %arg2[%c0_1, %c0_2] : memref<32x128xbf16, #tpu.memory_space<vmem>>, vector<32x128xbf16>
    %cst = arith.constant dense<0.000000e+00> : vector<16x128xf32>
    %2 = tpu.matmul %0, %1, %cst {dimension_numbers = #tpu.dot_dimension_numbers<[1], [0], [0], [1], [0, 0, 1, 1], [], []>} : vector<16x32xbf16>, vector<32x128xbf16>, vector<16x128xf32> -> vector<16x128xf32>
    %c0_3 = arith.constant 0 : index
    %c0_4 = arith.constant 0 : index
    %3 = vector.load %arg3[%c0_3, %c0_4] : memref<1x128xf32, #tpu.memory_space<vmem>>, vector<1x128xf32>
    %4 = vector.broadcast %3 : vector<1x128xf32> to vector<16x128xf32>
    %5 = arith.addf %2, %4 : vector<16x128xf32>
    %cst_5 = arith.constant 5.000000e-01 : f32
    %6 = vector.broadcast %cst_5 : f32 to vector<16x128xf32>
    %7 = arith.mulf %6, %5 : vector<16x128xf32>
    %cst_6 = arith.constant 0.707106769 : f32
    %8 = vector.broadcast %cst_6 : f32 to vector<16x128xf32>
    %9 = arith.mulf %5, %8 : vector<16x128xf32>
    %10 = math.erf %9 : vector<16x128xf32>
    %cst_7 = arith.constant 1.000000e+00 : f32
    %11 = vector.broadcast %cst_7 : f32 to vector<16x128xf32>
    %12 = arith.addf %11, %10 : vector<16x128xf32>
    %13 = arith.mulf %7, %12 : vector<16x128xf32>
    %14 = arith.truncf %13 : vector<16x128xf32> to vector<16x128xbf16>
    %c0_8 = arith.constant 0 : index
    %c0_9 = arith.constant 0 : index
    %15 = vector.load %arg4[%c0_8, %c0_9] : memref<128x128xbf16, #tpu.memory_space<vmem>>, vector<128x128xbf16>
    %cst_10 = arith.constant dense<0.000000e+00> : vector<16x128xf32>
    %16 = tpu.matmul %14, %15, %cst_10 {dimension_numbers = #tpu.dot_dimension_numbers<[1], [0], [0], [1], [0, 0, 1, 1], [], []>} : vector<16x128xbf16>, vector<128x128xbf16>, vector<16x128xf32> -> vector<16x128xf32>
    %c0_11 = arith.constant 0 : index
    %c0_12 = arith.constant 0 : index
    %17 = vector.load %arg5[%c0_11, %c0_12] : memref<1x128xf32, #tpu.memory_space<vmem>>, vector<1x128xf32>
    %18 = vector.broadcast %17 : vector<1x128xf32> to vector<16x128xf32>
    %19 = arith.addf %16, %18 : vector<16x128xf32>
    %c0_13 = arith.constant 0 : index
    %c0_14 = arith.constant 0 : index
    %20 = vector.load %arg6[%c0_13, %c0_14] : memref<16x128xf32, #tpu.memory_space<vmem>>, vector<16x128xf32>
    tpu.vector_store %arg6[%c0_13, %c0_14], %19 {strides = array<i32>} : memref<16x128xf32, #tpu.memory_space<vmem>>, vector<16x128xf32>,
    return
  }
  func.func @transform_0(%arg0: i32) -> (i32, i32) {
    %c0_i32 = arith.constant 0 : i32
    %c0_i32_0 = arith.constant 0 : i32
    return %arg0, %c0_i32 : i32, i32
  }
  func.func @transform_1(%arg0: i32) -> (i32, i32) {
    %c0_i32 = arith.constant 0 : i32
    %c0_i32_0 = arith.constant 0 : i32
    %c0_i32_1 = arith.constant 0 : i32
    return %c0_i32, %c0_i32_0 : i32, i32
  }
  func.func @transform_2(%arg0: i32) -> (i32, i32) {
    %c0_i32 = arith.constant 0 : i32
    %c0_i32_0 = arith.constant 0 : i32
    %c0_i32_1 = arith.constant 0 : i32
    return %c0_i32, %c0_i32_0 : i32, i32
  }
  func.func @transform_3(%arg0: i32) -> (i32, i32) {
    %c0_i32 = arith.constant 0 : i32
    %c0_i32_0 = arith.constant 0 : i32
    %c0_i32_1 = arith.constant 0 : i32
    return %c0_i32, %c0_i32_0 : i32, i32
  }
  func.func @transform_4(%arg0: i32) -> (i32, i32) {
    %c0_i32 = arith.constant 0 : i32
    %c0_i32_0 = arith.constant 0 : i32
    %c0_i32_1 = arith.constant 0 : i32
    return %c0_i32, %c0_i32_0 : i32, i32
  }
  func.func @transform_5(%arg0: i32) -> (i32, i32) {
    %c0_i32 = arith.constant 0 : i32
    %c0_i32_0 = arith.constant 0 : i32
    return %arg0, %c0_i32 : i32, i32
  }
}

</mosaic_0001>

<bundles_post_ra>
// kernel: tpu_custom_call.1
= control target key start
LH: loop header
LB: loop body
LE: loop exit
PB: predicated region body
PF: predicated region fallthrough
CT: control target
= control target key end

     0   :  { %10 = vsyncpa [#allocation3], 0  ;;  %s504_s0 = inlined_call_operand.hbm [shape: bf16[16,32], index: 0, kind: input, shape index: {}]   ;;  %s505_s1 = inlined_call_operand.hbm [shape: bf16[32,128], index: 1, kind: input, shape index: {}]   ;;  %s506_s2 = inlined_call_operand.vmem [shape: f32[1,128], index: 2, kind: input, shape index: {}]   ;;  %s507_s3 = inlined_call_operand.hbm [shape: bf16[128,128], index: 3, kind: input, shape index: {}]   ;;  %s508_s4 = inlined_call_operand.vmem [shape: f32[1,128], index: 4, kind: input, shape index: {}]   ;;  %s509_s5 = inlined_call_operand.hbm [shape: f32[16,128], index: 5, kind: output, shape index: {}]  }
   0x1   :  { %11 = vsyncpa [#allocation6], 0 }
   0x2   :  { %12 = vsyncpa [#allocation4], 0  ;;  %s446_s18 = smov [#allocation5]   ;;  %s447_s20 = smov [#allocation2]  }
   0x3   :  { %s30_s19 = sshll.u32 %s446_s18, 4  ;;  %s18_s21 = sshll.u32 %s447_s20, 4  ;;  %s31_s19 = int_to_ptr.vmem [resolvable:$true] %s30_s19  ;;  %s19_s21 = int_to_ptr.vmem [resolvable:$true] %s18_s21 }
   0x4   :  { %s368_s22 = scalar_lea.vmem %s31_s19, 256  ;;  %p373_p1 = scmp.lt.s32.totalorder %s31_s19, %s31_s19 }
   0x5   :  { %p369_p0 = scmp.ne.s32.totalorder %s31_s19, %s368_s22  ;;  %p374_p2 = scmp.lt.s32.totalorder %s368_s22, %s368_s22 }
   0x7   :  { %p375_p3 = por %p374_p2, %p373_p1 }
   0x9   :  { %p376_p4 = pnand %p375_p3, %p369_p0 }
   0xb   :  { %379 = shalt.err (!%p376_p4)
}
   0xc   :  { %s448_s23 = smov 64   ;;  %s449_s24 = smov 4  }
   0xd   :  { %36 = dma.hbm_to_vmem [thread:$0]  %s505_s1, 256, %s31_s19, [#allocation6], %s448_s23, %s448_s23, %s449_s24  }
   0xe   :  { %s388_s27 = scalar_lea.vmem %s19_s21, 128  ;;  %p393_p6 = scmp.lt.s32.totalorder %s19_s21, %s19_s21 }
   0xf   :  { %p389_p5 = scmp.ne.s32.totalorder %s19_s21, %s388_s27  ;;  %p394_p7 = scmp.lt.s32.totalorder %s388_s27, %s388_s27 }
  0x11   :  { %p395_p8 = por %p394_p7, %p393_p6 }
  0x13   :  { %p396_p9 = pnand %p395_p8, %p389_p5 }
  0x15   :  { %399 = shalt.err (!%p396_p9)
}
  0x16   :  { %24 = dma.hbm_to_vmem [thread:$0]  %s504_s0, 128, %s19_s21, [#allocation3], %s448_s23, %s448_s23, %s449_s24  }
  0x17   :  { %s450_s30 = smov [#allocation7]  }
  0x18   :  { %s44_s6 = sshll.u32 %s450_s30, 4  ;;  %s45_s6 = int_to_ptr.vmem [resolvable:$true] %s44_s6 }
  0x19   :  { %s408_s7 = scalar_lea.vmem %s45_s6, 1024  ;;  %p413_p11 = scmp.lt.s32.totalorder %s45_s6, %s45_s6 }
  0x1a   :  { %p409_p10 = scmp.ne.s32.totalorder %s45_s6, %s408_s7  ;;  %p414_p12 = scmp.lt.s32.totalorder %s408_s7, %s408_s7 }
  0x1c   :  { %p415_p13 = por %p414_p12, %p413_p11 }
  0x1e   :  { %p416_p0 = pnand %p415_p13, %p409_p10 }
  0x20   :  { %419 = shalt.err (!%p416_p0)
}
  0x21   :  { %50 = dma.hbm_to_vmem [thread:$0]  %s507_s3, 1024, %s45_s6, [#allocation6], %s448_s23, %s448_s23, %s449_s24  }
  0x22   :  { %440 = dma.done.wait [#allocation3], 128  }
  0x23   :  { %441 = vsyncadd [#allocation3], 4294967168 }
  0x24   :  { %442 = dma.done.wait [#allocation6], 1280  }
  0x25   :  { %443 = vsyncadd [#allocation6], 4294966016  ;;  %v451_v0 = vmov 0.0   ;;  %vm452_vm0 = vmmov 0   ;;  %v345_v1 = vld [vmem:[#allocation5 + $0x8] sm:$0xff]   ;;  %v346_v2 = vld [vmem:[#allocation5] sm:$0xff]  }
  0x26   :  { %307 = vmatprep.subr.bf16.mxu0 %v451_v0  ;;  %311 = vmatprep.mubr.msk.bf16.mxu0 %vm452_vm0, %v451_v0  ;;  %v348_v3 = vld [vmem:[#allocation7 + $0x38] sm:$0xff]   ;;  %v347_v4 = vld [vmem:[#allocation2] sm:$0xff]   ;;  %vm93_vm1 = vcmask 261120   ;;  %v349_v5 = vld [vmem:[#allocation7 + $0x30] sm:$0xff]   ;;  %s453_s10 = smov [#allocation8]  }
  0x27   :  { %315 = vmatprep.subr.bf16.mxu1 %v451_v0  ;;  %331 = vmatprep.mubr.msk.bf16.mxu1 %vm452_vm0, %v451_v0  ;;  %v350_v6 = vld [vmem:[#allocation7 + $0x28] sm:$0xff]   ;;  %v351_v7 = vld [vmem:[#allocation7 + $0x20] sm:$0xff]   ;;  %v352_v8 = vld [vmem:[#allocation7 + $0x18] sm:$0xff]   ;;  %s268_s11 = sshll.u32 %s453_s10, 4  ;;  %s269_s11 = int_to_ptr.vmem [resolvable:$true] %s268_s11 }
  0x28   :  { %308 = vmatpush3.bf16.msra.mxu0 %v345_v1  ;;  %316 = vmatpush3.bf16.msra.mxu1 %v348_v3  ;;  %v353_v9 = vld [vmem:[#allocation7 + $0x10] sm:$0xff]   ;;  %v354_v10 = vld [vmem:[#allocation7 + $0x8] sm:$0xff]   ;;  %v355_v11 = vld [vmem:[#allocation7] sm:$0xff]   ;;  %s420_s12 = scalar_lea.vmem %s269_s11, 256  ;;  %p425_p2 = scmp.lt.s32.totalorder %s269_s11, %s269_s11 }
  0x29   :  { %309 = vmatprep.subr.bf16.mxu0 %v451_v0  ;;  %317 = vmatprep.subr.bf16.mxu1 %v451_v0  ;;  %v281_v12 = vld [vmem:[%s506_s2] ss:$0 sm:$0xff]  ;;  %p421_p1 = scmp.ne.s32.totalorder %s269_s11, %s420_s12  ;;  %p426_p3 = scmp.lt.s32.totalorder %s420_s12, %s420_s12 }
  0x2a   :  { %v286_v30 = vld [vmem:[%s508_s4] ss:$0 sm:$0xff] }
  0x2b   :  { %p427_p4 = por %p426_p3, %p425_p2 }
  0x2c   :  { %310 = vmatpush3.bf16.msra.mxu0 %v346_v2  ;;  %318 = vmatpush3.bf16.msra.mxu1 %v349_v5 }
  0x2d   :  { %319 = vmatprep.subr.bf16.mxu1 %v451_v0  ;;  %p428_p5 = pnand %p427_p4, %p421_p1 }
  0x2f   :  { %312 = vmatmul.mubr.msk.bf16.vlgmr.msra.gmra.mxu0 %vm93_vm1, %v347_v4 }
  0x30   :  { %320 = vmatpush3.bf16.msra.mxu1 %v350_v6 }
  0x31   :  { %321 = vmatprep.subr.bf16.mxu1 %v451_v0 }
  0x34   :  { %322 = vmatpush3.bf16.msra.mxu1 %v351_v7 }
  0x35   :  { %323 = vmatprep.subr.bf16.mxu1 %v451_v0 }
  0x38   :  { %324 = vmatpush3.bf16.msra.mxu1 %v352_v8 }
  0x39   :  { %325 = vmatprep.subr.bf16.mxu1 %v451_v0 }
  0x3c   :  { %326 = vmatpush3.bf16.msra.mxu1 %v353_v9 }
  0x3d   :  { %327 = vmatprep.subr.bf16.mxu1 %v451_v0 }
  0x40   :  { %328 = vmatpush3.bf16.msra.mxu1 %v354_v10 }
  0x41   :  { %329 = vmatprep.subr.bf16.mxu1 %v451_v0 }
  0x44   :  { %330 = vmatpush3.bf16.msra.mxu1 %v355_v11 }
  0xef   :  { %v131_v13 = vpop.f32.mrf.mxu0 }
  0xf0   :  { %v132_v14 = vadd.f32 %v281_v12, %v131_v13 }
  0xf1   :  { %v313_v15 = vpop.f32.mrf.mxu0 }
  0xf2   :  { %v140_v16 = vmul.f32 0.70710677, %v132_v14  ;;  %v138_v24 = vmul.f32 0.5, %v132_v14 }
  0xf3   :  { %v134_v17 = vpop.f32.mrf.mxu0 }
  0xf4   :  { %356 = verf.f32 %v140_v16  ;;  %v135_v18 = vadd.f32 %v281_v12, %v134_v17 }
  0xf5   :  { %v314_v19 = vpop.f32.mrf.mxu0 }
  0xf6   :  { %v141_v20 = vmul.f32 0.70710677, %v135_v18  ;;  %v139_v25 = vmul.f32 0.5, %v135_v18 }
  0xf8   :  { %358 = verf.f32 %v141_v20 }
 0x101   :  { %v357_v21 = vpop.eup %356 }
 0x102   :  { %v144_v22 = vadd.f32 1.0, %v357_v21 }
 0x104   :  { %v146_v27 = vmul.f32 %v144_v22, %v138_v24 }
 0x105   :  { %v359_v23 = vpop.eup %358 }
 0x106   :  { %v145_v26 = vadd.f32 1.0, %v359_v23 }
 0x108   :  { %v147_v28 = vmul.f32 %v145_v26, %v139_v25 }
 0x10a   :  { %v148_v29 = vpack.c.bf16 %v147_v28, %v146_v27 }
 0x10c   :  { %332 = vmatmul.mubr.bf16.vlgmr.msra.gmra.mxu1 %v148_v29 }
 0x1cc   :  { %v254_v31 = vpop.f32.mrf.mxu1 }
 0x1cd   :  { %v255_v32 = vadd.f32 %v286_v30, %v254_v31 }
 0x1ce   :  { %v333_v33 = vpop.f32.mrf.mxu1 }
 0x1cf   :  { %261 = vst [vmem:[#allocation8] sm:$0xff] %v255_v32 }
 0x1d0   :  { %v257_v34 = vpop.f32.mrf.mxu1 }
 0x1d1   :  { %v258_v35 = vadd.f32 %v286_v30, %v257_v34 }
 0x1d2   :  { %v334_v36 = vpop.f32.mrf.mxu1 }
 0x1d3   :  { %262 = vst [vmem:[#allocation8 + $0x8] sm:$0xff] %v258_v35 }
 0x1d4   :  { %431 = shalt.err (!%p428_p5)
}
 0x1d5   :  { %s454_s13 = smov 128   ;;  %s455_s4 = smov 8  }
 0x1d6   :  { %274 = dma.vmem_to_hbm [thread:$0]  %s269_s11, 256, %s509_s5, [#allocation4], %s454_s13, %s454_s13, %s455_s4  }
 0x1d7   :  { %444 = dma.done.wait [#allocation4], 256  }
 0x1d8   :  { %445 = vsyncadd [#allocation4], 4294967040 }
 0x1d9   :  { %278 = vsyncpa [#allocation3], 1 }
 0x1da   :  { %279 = vsyncpa [#allocation6], 1 }
 0x1db   :  { %280 = vsyncpa [#allocation4], 1 }

</bundles_post_ra>
